<compile_context>
chip_gen: v7x
topology: tpu7x:2x2x1
jax: 0.10.0
libtpu: 0.0.40
codegen_flags: <defaults>
</compile_context>

<pallas_src>
import math

import jax
import jax.numpy as jnp
from jax.experimental import pallas as pl
from jax.experimental.pallas import tpu as pltpu


# ----------------------------------------------------------------------------
# Pallas kernel: fused (x @ W + b) -> log_softmax(last dim)
# ----------------------------------------------------------------------------
def _generator_kernel(x_ref, w_ref, b_ref, o_ref):
    # x_ref: (TILE_R, D), w_ref: (D, V), b_ref: (1, V), o_ref: (TILE_R, V)
    logits = jnp.dot(x_ref[...], w_ref[...], preferred_element_type=jnp.float32)
    logits = logits + b_ref[...].astype(jnp.float32)

    # numerically stable log-softmax along the vocab (lane) dimension
    m = jnp.max(logits, axis=-1, keepdims=True)
    shifted = logits - m
    lse = jnp.log(jnp.sum(jnp.exp(shifted), axis=-1, keepdims=True))
    o_ref[...] = (shifted - lse).astype(o_ref.dtype)


# ----------------------------------------------------------------------------
# Tiling helpers
# ----------------------------------------------------------------------------
def _round_up(x, m):
    return ((x + m - 1) // m) * m


def _pick_row_tile(R, D, V, itemsize=4, budget_bytes=24 << 20):
    """Row-tile size: a multiple of 8, capped at 512 rows and by a conservative
    VMEM budget (weight/bias resident once + double-buffered x/out tiles).
    Splits a single-tile batch into >= 2 grid steps so both TensorCores on
    dual-TC chips get work and the pipeline double-buffers."""
    resident = (D * V + V) * itemsize            # grid-invariant weight + bias
    per_row = 2 * (D + V) * itemsize             # double-buffered x row + out row
    max_rows = max(8, (budget_bytes - resident) // max(per_row, 1))
    tile = min(512, _round_up(R, 8), (max_rows // 8) * 8)
    tile = max(tile, 8)
    if R <= tile and R >= 16:
        # whole problem fits in one block: split in two for megacore/pipelining
        tile = max(8, _round_up((R + 1) // 2, 8))
    return tile


# ----------------------------------------------------------------------------
# Wrapper
# ----------------------------------------------------------------------------
def generator_forward(params, x):
    """Pallas implementation of Generator.forward: log_softmax(x @ W.T + b)."""
    w, b = params["w"], params["b"]          # w: (V, D), b: (V,)
    V, D = w.shape
    lead = x.shape[:-1]
    R = math.prod(lead) if lead else 1

    x2d = x.reshape(R, D)
    wt = jnp.transpose(w)                    # (D, V) -- one-time layout change, outside kernel
    b2 = b.reshape(1, V)

    itemsize = jnp.dtype(x.dtype).itemsize
    tile_r = _pick_row_tile(R, D, V, itemsize)
    Rp = _round_up(R, tile_r)
    if Rp != R:
        # pad rows up to a tile multiple; padded rows are sliced off afterwards
        x2d = jnp.pad(x2d, ((0, Rp - R), (0, 0)))
    grid = (Rp // tile_r,)

    out = pl.pallas_call(
        _generator_kernel,
        out_shape=jax.ShapeDtypeStruct((Rp, V), x.dtype),
        grid=grid,
        in_specs=[
            pl.BlockSpec((tile_r, D), lambda i: (i, 0)),   # row tile of activations
            pl.BlockSpec((D, V), lambda i: (0, 0)),        # grid-invariant weight (resident)
            pl.BlockSpec((1, V), lambda i: (0, 0)),        # grid-invariant bias (resident)
        ],
        out_specs=pl.BlockSpec((tile_r, V), lambda i: (i, 0)),  # lane-dense (V = k*128)
        compiler_params=pltpu.CompilerParams(
            dimension_semantics=("parallel",),
        ),
    )(x2d, wt, b2)

    if Rp != R:
        out = out[:R]
    return out.reshape(*lead, V)


# ----------------------------------------------------------------------------
# Pure-JAX reference (for self-check)
# ----------------------------------------------------------------------------
def reference_forward(params, x):
    logits = x @ params["w"].T + params["b"]
    return jax.nn.log_softmax(logits, axis=-1)


# ----------------------------------------------------------------------------
# Main
# ----------------------------------------------------------------------------
if __name__ == "__main__":
    B, S, D, V = 2, 8, 32, 512        # batch, seq, decoder_dim, vocab_len

    key0 = jax.random.PRNGKey(0)
    k_w, k_b, k_x = jax.random.split(key0, 3)

    bound = 1.0 / math.sqrt(D)        # nn.Linear default init range
    params = {
        "w": jax.random.uniform(k_w, (V, D), jnp.float32, -bound, bound),
        "b": jax.random.uniform(k_b, (V,), jnp.float32, -bound, bound),
    }
    x = jax.random.normal(k_x, (B, S, D), jnp.float32)

    out = generator_forward(params, x)
    out = jax.block_until_ready(out)

    ref = reference_forward(params, x)
    assert out.shape == (B, S, V)
    assert jnp.allclose(out, ref, atol=1e-4, rtol=1e-4), "mismatch vs reference"
    # log-probabilities must normalize: logsumexp over vocab == 0
    assert jnp.allclose(jax.scipy.special.logsumexp(out, axis=-1), 0.0, atol=1e-4)

    print("KERNEL_OK")
</pallas_src>

<mosaic_0001>
module attributes {stable_mosaic.version = 11 : i64} {
  func.func @_generator_kernel(%arg0: i32, %arg1: memref<8x32xf32, #tpu.memory_space<vmem>>, %arg2: memref<32x512xf32, #tpu.memory_space<vmem>>, %arg3: memref<1x512xf32, #tpu.memory_space<vmem>>, %arg4: memref<8x512xf32, #tpu.memory_space<vmem>>) attributes {dimension_semantics = [#tpu.dimension_semantics<parallel>], iteration_bounds = array<i64: 2>, scalar_prefetch = 0 : i64, scratch_operands = 0 : i64, tpu.core_type = #tpu.core_type<tc>, window_params = [{transform_indices = @transform_0, window_bounds = array<i64: 8, 32>}, {pipeline_mode = #tpu.pipeline_mode<synchronous>, transform_indices = @transform_1, window_bounds = array<i64: 32, 512>}, {pipeline_mode = #tpu.pipeline_mode<synchronous>, transform_indices = @transform_2, window_bounds = array<i64: 1, 512>}, {transform_indices = @transform_3, window_bounds = array<i64: 8, 512>}]} {
    %c0 = arith.constant 0 : index
    %c0_0 = arith.constant 0 : index
    %0 = vector.load %arg1[%c0, %c0_0] : memref<8x32xf32, #tpu.memory_space<vmem>>, vector<8x32xf32>
    %c0_1 = arith.constant 0 : index
    %c0_2 = arith.constant 0 : index
    %1 = vector.load %arg2[%c0_1, %c0_2] : memref<32x512xf32, #tpu.memory_space<vmem>>, vector<32x512xf32>
    %cst = arith.constant dense<0.000000e+00> : vector<8x512xf32>
    %2 = tpu.matmul %0, %1, %cst {dimension_numbers = #tpu.dot_dimension_numbers<[1], [0], [0], [1], [0, 0, 1, 1], [], []>} : vector<8x32xf32>, vector<32x512xf32>, vector<8x512xf32> -> vector<8x512xf32>
    %c0_3 = arith.constant 0 : index
    %c0_4 = arith.constant 0 : index
    %3 = vector.load %arg3[%c0_3, %c0_4] : memref<1x512xf32, #tpu.memory_space<vmem>>, vector<1x512xf32>
    %4 = vector.broadcast %3 : vector<1x512xf32> to vector<8x512xf32>
    %5 = arith.addf %2, %4 : vector<8x512xf32>
    %cst_5 = arith.constant dense<0xFF800000> : vector<8xf32>
    %6 = vector.multi_reduction <maximumf>, %5, %cst_5 [1] : vector<8x512xf32> to vector<8xf32>
    %7 = vector.shape_cast %6 : vector<8xf32> to vector<8x1xf32>
    %8 = vector.broadcast %7 : vector<8x1xf32> to vector<8x512xf32>
    %9 = arith.subf %5, %8 : vector<8x512xf32>
    %10 = math.exp %9 : vector<8x512xf32>
    %cst_6 = arith.constant dense<0.000000e+00> : vector<8xf32>
    %11 = vector.multi_reduction <add>, %10, %cst_6 [1] : vector<8x512xf32> to vector<8xf32>
    %12 = vector.shape_cast %11 : vector<8xf32> to vector<8x1xf32>
    %13 = math.log %12 : vector<8x1xf32>
    %14 = vector.broadcast %13 : vector<8x1xf32> to vector<8x512xf32>
    %15 = arith.subf %9, %14 : vector<8x512xf32>
    %c0_7 = arith.constant 0 : index
    %c0_8 = arith.constant 0 : index
    %16 = vector.load %arg4[%c0_7, %c0_8] : memref<8x512xf32, #tpu.memory_space<vmem>>, vector<8x512xf32>
    tpu.vector_store %arg4[%c0_7, %c0_8], %15 {strides = array<i32>} : memref<8x512xf32, #tpu.memory_space<vmem>>, vector<8x512xf32>,
    return
  }
  func.func @transform_0(%arg0: i32) -> (i32, i32) {
    %c0_i32 = arith.constant 0 : i32
    %c0_i32_0 = arith.constant 0 : i32
    return %arg0, %c0_i32 : i32, i32
  }
  func.func @transform_1(%arg0: i32) -> (i32, i32) {
    %c0_i32 = arith.constant 0 : i32
    %c0_i32_0 = arith.constant 0 : i32
    %c0_i32_1 = arith.constant 0 : i32
    return %c0_i32, %c0_i32_0 : i32, i32
  }
  func.func @transform_2(%arg0: i32) -> (i32, i32) {
    %c0_i32 = arith.constant 0 : i32
    %c0_i32_0 = arith.constant 0 : i32
    %c0_i32_1 = arith.constant 0 : i32
    return %c0_i32, %c0_i32_0 : i32, i32
  }
  func.func @transform_3(%arg0: i32) -> (i32, i32) {
    %c0_i32 = arith.constant 0 : i32
    %c0_i32_0 = arith.constant 0 : i32
    return %arg0, %c0_i32 : i32, i32
  }
}

</mosaic_0001>

<bundles_post_ra>
// kernel: tpu_custom_call.1
= control target key start
LH: loop header
LB: loop body
LE: loop exit
PB: predicated region body
PF: predicated region fallthrough
CT: control target
= control target key end

     0   :  { %8 = vsyncpa [#allocation3], 0  ;;  %s976_s0 = inlined_call_operand.hbm [shape: f32[16,32], index: 0, kind: input, shape index: {}]   ;;  %s977_s1 = inlined_call_operand.hbm [shape: f32[32,512], index: 1, kind: input, shape index: {}]   ;;  %s978_s2 = inlined_call_operand.vmem [shape: f32[1,512], index: 2, kind: input, shape index: {}]   ;;  %s979_s3 = inlined_call_operand.hbm [shape: f32[16,512], index: 3, kind: output, shape index: {}]  }
   0x1   :  { %10 = vsyncpa [#allocation3 + $0x1], 0 }
   0x2   :  { %11 = vsyncpa [#allocation6], 0 }
   0x3   :  { %12 = vsyncpa [#allocation4], 0 }
   0x4   :  { %14 = vsyncpa [#allocation4 + $0x1], 0  ;;  %s773_s12 = smov 0   ;;  %s775_s13 = smov 0  }
   0x5   :  { %s777_s14 = smov 0   ;;  %s779_s15 = smov 0  }
   0x6 LB: > { %s794_s16 = sadd.s32 4294967295, %s745_s15   ;;  %s513_s17 = sadd.s32 4294967294, %s745_s15   ;;  %s745_s15 = sphi %s779_s15, %s999_s15   ;;  %s741_s14 = sphi %s777_s14, %s998_s14   ;;  %s737_s13 = sphi %s775_s13, %s997_s13   ;;  %s733_s12 = sphi %s773_s12, %s996_s12  }
   0x7   : > { %p40_p0 = scmp.ne.s32.totalorder %s737_s13, %s733_s12  ;;  %p980_p1 = scmp.eq.s32.totalorder %s794_s16, 0 }
   0x8   : > { %p112_p3 = scmp.eq.s32.totalorder %s513_s17, 1  ;;  %p514_p5 = scmp.ge.s32.totalorder %s745_s15, 1 }
   0x9   : > { %p803_p4 = por %p980_p1, %p40_p0  ;;  %p119_p7 = scmp.lt.s32.totalorder %s745_s15, 3 }
   0xa   : > { %p808_p6 = por %p112_p3, %p40_p0  ;;  %s747_s21 = smov [#allocation5]  }
   0xb   : > { %s983_s18 = scalar_select %p803_p4, 1, 0 }
   0xc   : > { %s984_s19 = scalar_select %p808_p6, 1, 0 }
   0xd   : > { %p813_p8 = pnand %p514_p5, %p119_p7  ;;  %s131_s22 = sshll.u32 %s747_s21, 4  ;;  %s817_s22 = int_to_ptr.vmem [resolvable:$true] %s131_s22 }
   0xe   : > { %s829_s24 = sadd.s32 1, %s745_s15   ;;  %s27_s25 = sadd.s32 1, %s741_s14 }
   0xf   : > { %s985_s20 = scalar_select %p813_p8, 1, 0 }
  0x10   : > { %p555_p9 = pneg %p813_p8  ;;  %s24_s26 = ssub.s32 %s745_s15, %s829_s24 }
  0x11   : > { %s617_s29 = scalar_lea.hbm %s977_s1, 2048 }
  0x12   : > { %p824_p11 = pnand %p555_p9, %p980_p1  ;;  %p618_p12 = scmp.ne.s32.totalorder %s977_s1, %s617_s29 }
  0x13   : > { %p624_p5 = scmp.lt.u32.totalorder %s617_s29, %s977_s1 }
  0x14   : > { %p619_p13 = pneg %p824_p11 }
  0x16   : > { %p620_p0 = pnand %p619_p13, %p618_p12 }
  0x18   : > { %p621_p3 = pneg %p620_p0 }
  0x1a   : > { %p626_p7 = pnand %p624_p5, %p621_p3 }
  0x1c   : > { %629 = shalt.err (!%p626_p7)
}
  0x1d   : > { %s630_s7 = scalar_lea.vmem %s817_s22, 2048  ;;  %p638_p2 = scmp.lt.s32.totalorder %s817_s22, %s817_s22 }
  0x1e   : > { %p631_p9 = scmp.ne.s32.totalorder %s817_s22, %s630_s7  ;;  %p639_p6 = scmp.lt.s32.totalorder %s630_s7, %s630_s7 }
  0x20   : > { %p633_p10 = pnand %p631_p9, %p619_p13  ;;  %p640_p4 = por %p639_p6, %p638_p2 }
  0x22   : > { %p634_p1 = pneg %p633_p10 }
  0x24   : > { %p641_p8 = pnand %p640_p4, %p634_p1 }
  0x26   : > { %644 = shalt.err (!%p641_p8)
}
  0x27   : > { %s748_s8 = smov 512   ;;  %s749_s9 = smov 32  }
  0x28   : > { %558 = dma.hbm_to_vmem [thread:$0]  (!%p824_p11), %s977_s1, 2048, %s817_s22, [#allocation6], %s748_s8, %s748_s8, %s749_s9  }
  0x29   : > { %p25_p2 = scmp.eq.s32.totalorder %s24_s26, 0  ;;  %p34_p1 = scmp.ne.s32.totalorder %s741_s14, %s737_s13 }
  0x2a   : > { %p35_p4 = scmp.eq.s32.totalorder %s745_s15, 0  ;;  %p568_p6 = scmp.lt.s32.totalorder %s745_s15, 2 }
  0x2b   : > { %s860_s17 = scalar_select %p25_p2, %s741_s14, %s27_s25  }
  0x2c   : > { %p36_p8 = por %p35_p4, %p34_p1  ;;  %p987_p10 = scmp.eq.s32.totalorder %s794_s16, 1 }
  0x2d   : > { %s148_s27 = sand.u32 1, %s741_s14   ;;  %s518_s28 = sshll.u32 %s745_s15, 7 }
  0x2e   : > { %p864_p12 = por %p987_p10, %p34_p1  ;;  %s517_s29 = sshll.u32 %s148_s27, 3 }
  0x2f   : > { %s873_s4 = scalar_lea.hbm %s976_s0, %s518_s28  ;;  %s152_s22 = scalar_lea.vmem [#allocation2], %s517_s29 }
  0x30   : > { %s159_s25 = sshll.u32 %s152_s22, 4  ;;  %p875_p11 = pnand %p568_p6, %p36_p8  ;;  %s879_s25 = int_to_ptr.vmem [resolvable:$true] %s159_s25 }
  0x31   : > { %s149_s5 = scalar_lea.sflag [#allocation3], %s148_s27  ;;  %s645_s6 = scalar_lea.hbm %s873_s4, 128 }
  0x32   : > { %p646_p13 = scmp.ne.s32.totalorder %s873_s4, %s645_s6  ;;  %p647_p0 = pneg %p875_p11 }
  0x33   : > { %s650_s9 = scalar_lea.hbm %s976_s0, 256  ;;  %p651_p7 = scmp.lt.u32.totalorder %s873_s4, %s976_s0 }
  0x34   : > { %p648_p3 = pnand %p647_p0, %p646_p13  ;;  %p652_p9 = scmp.lt.u32.totalorder %s650_s9, %s645_s6 }
  0x35   : > { %p654_p1 = scmp.lt.u32.totalorder %s645_s6, %s873_s4 }
  0x36   : > { %p649_p5 = pneg %p648_p3  ;;  %p653_p2 = por %p652_p9, %p651_p7 }
  0x38   : > { %p655_p4 = por %p654_p1, %p653_p2 }
  0x3a   : > { %p656_p6 = pnand %p655_p4, %p649_p5 }
  0x3c   : > { %659 = shalt.err (!%p656_p6)
}
  0x3d   : > { %s660_s27 = scalar_lea.vmem %s879_s25, 128  ;;  %s750_s28 = smov [#allocation2]  }
  0x3e   : > { %p661_p8 = scmp.ne.s32.totalorder %s879_s25, %s660_s27  ;;  %s665_s29 = sshll.u32 %s750_s28, 4  ;;  %s666_s29 = int_to_ptr.vmem [resolvable:$false] %s665_s29 }
  0x3f   : > { %s667_s23 = scalar_lea.vmem %s666_s29, 256  ;;  %p668_p3 = scmp.lt.s32.totalorder %s879_s25, %s666_s29 }
  0x40   : > { %p663_p10 = pnand %p661_p8, %p647_p0  ;;  %p669_p7 = scmp.lt.s32.totalorder %s667_s23, %s660_s27 }
  0x42   : > { %p664_p13 = pneg %p663_p10  ;;  %p670_p9 = por %p669_p7, %p668_p3 }
  0x44   : > { %p671_p2 = pnand %p670_p9, %p664_p13 }
  0x46   : > { %674 = shalt.err (!%p671_p2)
}
  0x47   : > { %562 = dma.hbm_to_vmem [thread:$0]  (!%p875_p11), %s873_s4, 128, %s879_s25, %s149_s5  }
  0x48   : > { %p990_p5 = scmp.ne.s32.totalorder %s985_s20, 0 }
  0x49   : > { %s909_s30 = sand.u32 (!%p990_p5), 1, %s737_s13   ;;  %p991_p0 = scmp.ne.s32.totalorder (!%p990_p5), %s983_s18, 0 }
  0x4a   : > { %168 = sbr.rel (%p990_p5) target bundleno = 653 (0x28d), region = 32  ;;  %s520_s22 = sshll.u32 (!%p990_p5), %s909_s30, 3 }
  0x4b   : > { %s171_s6 = scalar_lea.sflag (!%p990_p5), [#allocation3], %s909_s30  ;;  %s913_s7 = scalar_lea.vmem (!%p990_p5), [#allocation2], %s520_s22 }
  0x51   : > { %720 = dma.done.wait (%p991_p0), %s171_s6, 128  }
  0x52   : > { %722 = vsyncadd (%p991_p0), %s171_s6, 4294967168  ;;  %p992_p11 = scmp.eq.s32.totalorder %s794_s16, 0 }
  0x54   : > { %724 = dma.done.wait (%p992_p11), [#allocation6], 2048   ;;  %p993_p1 = pmov %p992_p11 }
  0x55   : > { %v751_v0 = vmov 0.0   ;;  %v203_v1 = vld [vmem:[#allocation5 + $0x8] sm:$0xff]  ;;  %v205_v3 = vld [vmem:[#allocation5 + $0x18] sm:$0xff]  ;;  %v202_v6 = vld [vmem:[#allocation5] sm:$0xff]  ;;  %vm240_vm0 = vcmask 261120   ;;  %v220_v26 = vlaneseq  ;;  %s522_s4 = sshll.u32 %s909_s30, 5 }
  0x56   : > { %726 = vsyncadd (%p993_p1), [#allocation6], 4294965248  ;;  %308 = vmatprep.mubr.f32.mxu0 %v751_v0  ;;  %379 = vmatprep.mubr.f32.mxu1 %v751_v0  ;;  %v207_v2 = vld [vmem:[#allocation5 + $0x28] sm:$0xff]  ;;  %v209_v5 = vld [vmem:[#allocation5 + $0x38] sm:$0xff]  ;;  %s530_s25 = sshll.u32 %s794_s16, 9  ;;  %s200_s26 = scalar_lea.vmem [#allocation7], %s522_s4 }
  0x57   : > { %v531_v4 = vpack.c.bf16 %v207_v2, %v203_v1  ;;  %v206_v7 = vld [vmem:[#allocation5 + $0x20] sm:$0xff]  ;;  %v539_v8 = vpack.c.bf16 %v209_v5, %v205_v3  ;;  %v204_v10 = vld [vmem:[#allocation5 + $0x10] sm:$0xff]  ;;  %v211_v12 = vld [vmem:[#allocation5 + $0x48] sm:$0xff]  ;;  %v221_v27 = vshrl.u32 %v220_v26, 7  ;;  %s433_s5 = sshll.u32 %s200_s26, 4  ;;  %s932_s10 = scalar_lea.hbm %s979_s3, %s530_s25  ;;  %s934_s5 = int_to_ptr.vmem [resolvable:$true] %s433_s5 }
  0x58   : > { %v533_v9 = vpack.c.bf16 %v206_v7, %v202_v6  ;;  %v208_v11 = vld [vmem:[#allocation5 + $0x30] sm:$0xff]  ;;  %v215_v14 = vld [vmem:[#allocation5 + $0x68] sm:$0xff]  ;;  %v213_v15 = vld [vmem:[#allocation5 + $0x58] sm:$0xff]  ;;  %s419_s16 = scalar_lea.sflag [#allocation4], %s909_s30  ;;  %s675_s11 = scalar_lea.vmem %s934_s5, 512 }
  0x59   : > { %532 = vmatprep.subr.bf16.mxu0 %v531_v4  ;;  %v541_v13 = vpack.c.bf16 %v208_v11, %v204_v10  ;;  %v217_v16 = vld [vmem:[#allocation5 + $0x78] sm:$0xff]  ;;  %540 = vmatprep.subr.bf16.mxu1 %v539_v8  ;;  %v535_v17 = vpack.c.bf16 %v215_v14, %v211_v12  ;;  %v210_v19 = vld [vmem:[#allocation5 + $0x40] sm:$0xff]  ;;  %v212_v21 = vld [vmem:[#allocation5 + $0x50] sm:$0xff]  ;;  %v222_v28 = vsub.s32 0, %v221_v27  ;;  %v230_v30 = vsub.s32 2, %v221_v27  ;;  %p676_p4 = scmp.ne.s32.totalorder %s934_s5, %s675_s11  ;;  %s752_s27 = smov [#allocation7]  }
  0x5a   : > { %534 = vmatpush1.bf16.msra.mxu0 %v533_v9  ;;  %v543_v18 = vpack.c.bf16 %v217_v16, %v213_v15  ;;  %v214_v20 = vld [vmem:[#allocation5 + $0x60] sm:$0xff]  ;;  %v216_v23 = vld [vmem:[#allocation5 + $0x70] sm:$0xff]  ;;  %v226_v31 = vsub.s32 1, %v221_v27  ;;  %v234_v32 = vsub.s32 3, %v221_v27  ;;  %s679_s28 = sshll.u32 %s752_s27, 4  ;;  %s680_s28 = int_to_ptr.vmem [resolvable:$false] %s679_s28 }
  0x5b   : > { %542 = vmatpush1.bf16.msra.mxu1 %v541_v13  ;;  %v537_v22 = vpack.c.bf16 %v214_v20, %v210_v19  ;;  %536 = vmatprep.subr.bf16.mxu0 %v535_v17  ;;  %v545_v24 = vpack.c.bf16 %v216_v23, %v212_v21  ;;  %v201_v25 = vld [vmem:[%s913_s7] sm:$0xff]  ;;  %p677_p6 = pnand %p676_p4, %p864_p12  ;;  %s681_s29 = scalar_lea.vmem %s680_s28, 1024 }
  0x5c   : > { %544 = vmatprep.subr.bf16.mxu1 %v543_v18  ;;  %v218_v29 = vld [vmem:[%s978_s2] sm:$0xf]  ;;  %p682_p10 = scmp.lt.s32.totalorder %s934_s5, %s680_s28  ;;  %p683_p13 = scmp.lt.s32.totalorder %s681_s29, %s675_s11 }
  0x5d   : > { %v223_v33 = vrot.slane %v218_v29, %v222_v28  ;;  %v231_v34 = vrot.slane %v218_v29, %v230_v30  ;;  %v227_v35 = vrot.slane %v218_v29, %v226_v31  ;;  %v235_v36 = vrot.slane %v218_v29, %v234_v32  ;;  %p678_p8 = pneg %p677_p6 }
  0x5e   : > { %538 = vmatpush1.bf16.msra.mxu0 %v537_v22  ;;  %p684_p3 = por %p683_p13, %p682_p10 }
  0x5f   : > { %546 = vmatpush1.bf16.msra.mxu1 %v545_v24 }
  0x60   : > { %p685_p7 = pnand %p684_p3, %p678_p8 }
  0x61   : > { %523 = vmatmul.mubr.msk.f32.vlgmr.msra.gmra.mrb[0].mxu0 %vm240_vm0, %v201_v25 }
  0x62   : > { %524 = vmatmul.mubr.msk.f32.vlgmr.msra.gmra.mrb[0].mxu1 %vm240_vm0, %v201_v25 }
 0x134   : > { %v310_v37 = vpop.f32.mrb[0].mxu0 }
 0x135   : > { %v311_v38 = vadd.f32 %v310_v37, %v223_v33  ;;  %v381_v39 = vpop.f32.mrb[0].mxu1  ;;  %v312_v40 = vpop.f32.mrb[1].mxu0 }
 0x136   : > { %v382_v41 = vadd.f32 %v381_v39, %v231_v34  ;;  %v313_v42 = vadd.f32 %v312_v40, %v227_v35  ;;  %v383_v43 = vpop.f32.mrb[1].mxu1 }
 0x137   : > { %v384_v44 = vadd.f32 %v383_v43, %v235_v36 }
 0x138   : > { %v386_v45 = vmax.f32 %v311_v38, %v313_v42 }
 0x139   : > { %v387_v46 = vmax.f32 %v382_v41, %v384_v44 }
 0x13b   : > { %v388_v47 = vmax.f32 %v386_v45, %v387_v46 }
 0x13d   : > { %389 = vmax.xlane.f32.xlu0 %v388_v47 }
 0x1ca   : > { %v390_v48 = vpop.xlane.xlu0 %389 }
 0x1cb   : > { %v391_v49 = vsub.f32 %v311_v38, %v390_v48  ;;  %v392_v50 = vsub.f32 %v313_v42, %v390_v48  ;;  %v393_v51 = vsub.f32 %v382_v41, %v390_v48  ;;  %v394_v52 = vsub.f32 %v384_v44, %v390_v48 }
 0x1cd   : > { %v395_v53 = vmul.f32 1.442695, %v391_v49  ;;  %v397_v54 = vmul.f32 1.442695, %v392_v50  ;;  %v399_v55 = vmul.f32 1.442695, %v393_v51 }
 0x1ce   : > { %v401_v56 = vmul.f32 1.442695, %v394_v52 }
 0x1cf   : > { %607 = vpow2.f32 %v395_v53 }
 0x1d0   : > { %609 = vpow2.f32 %v397_v54 }
 0x1d1   : > { %611 = vpow2.f32 %v399_v55 }
 0x1d2   : > { %613 = vpow2.f32 %v401_v56 }
 0x1d9   : > { %v608_v57 = vpop.eup %607 }
 0x1da   : > { %v610_v58 = vpop.eup %609 }
 0x1db   : > { %v403_v59 = vadd.f32 %v610_v58, %v608_v57  ;;  %v612_v60 = vpop.eup %611 }
 0x1dc   : > { %v614_v62 = vpop.eup %613 }
 0x1dd   : > { %v404_v61 = vadd.f32 %v612_v60, %v403_v59 }
 0x1df   : > { %v405_v63 = vadd.f32 %v614_v62, %v404_v61 }
 0x1e1   : > { %406 = vadd.xlane.f32.xlu0 %v405_v63 }
 0x26e   : > { %v407_v0 = vpop.xlane.xlu0 %406 }
 0x26f   : > { %615 = vlog2.f32 %v407_v0 }
 0x279   : > { %v616_v1 = vpop.eup %615 }
 0x27a   : > { %v409_v2 = vmul.f32 0.6931472, %v616_v1 }
 0x27c   : > { %v410_v3 = vsub.f32 %v391_v49, %v409_v2  ;;  %v411_v4 = vsub.f32 %v392_v50, %v409_v2  ;;  %v412_v5 = vsub.f32 %v393_v51, %v409_v2  ;;  %v413_v6 = vsub.f32 %v394_v52, %v409_v2 }
 0x27e   : > { %414 = vst [vmem:[%s200_s26] sm:$0xff] %v410_v3  ;;  %415 = vst [vmem:[%s200_s26 + $0x8] sm:$0xff] %v411_v4 }
 0x27f   : > { %416 = vst [vmem:[%s200_s26 + $0x10] sm:$0xff] %v412_v5  ;;  %417 = vst [vmem:[%s200_s26 + $0x18] sm:$0xff] %v413_v6 }
 0x280   : > { %688 = shalt.err (!%p685_p7)
}
 0x281   : > { %s689_s23 = scalar_lea.hbm %s932_s10, 512  ;;  %s693_s6 = scalar_lea.hbm %s979_s3, 1024 }
 0x282   : > { %p690_p9 = scmp.ne.s32.totalorder %s932_s10, %s689_s23  ;;  %p694_p0 = scmp.lt.u32.totalorder %s932_s10, %s979_s3 }
 0x283   : > { %p695_p11 = scmp.lt.u32.totalorder %s693_s6, %s689_s23  ;;  %p697_p4 = scmp.lt.u32.totalorder %s689_s23, %s932_s10 }
 0x284   : > { %p691_p2 = pnand %p690_p9, %p864_p12 }
 0x285   : > { %p696_p1 = por %p695_p11, %p694_p0 }
 0x286   : > { %p692_p5 = pneg %p691_p2 }
 0x287   : > { %p698_p6 = por %p697_p4, %p696_p1 }
 0x289   : > { %p699_p8 = pnand %p698_p6, %p692_p5 }
 0x28b   : > { %702 = shalt.err (!%p699_p8)
}
 0x28c   : > { %553 = dma.vmem_to_hbm [thread:$0]  (%p864_p12), %s934_s5, 512, %s932_s10, %s419_s16  }
 0x28d PF: > { %s445_s20 = sand.u32 1, %s733_s12   ;;  %p994_p10 = scmp.ne.s32.totalorder %s984_s19, 0 }
 0x28e   : > { %p995_p13 = scmp.ge.s32.totalorder %s745_s15, 2  ;;  %s446_s4 = scalar_lea.sflag [#allocation4], %s445_s20 }
 0x290   : > { %p564_p3 = pnand %p995_p13, %p994_p10 }
 0x292   : > { %728 = dma.done.wait (!%p564_p3), %s446_s4, 512  }
 0x293   : > { %730 = vsyncadd (!%p564_p3), %s446_s4, 4294966784  ;;  %p17_p7 = scmp.ge.s32.totalorder %s829_s24, 4   ;;  %s996_s12 = smov %s737_s13 }
 0x294   : > { %s997_s13 = smov %s741_s14  ;;  %s998_s14 = smov %s860_s17 }
 0x295   : > { %s999_s15 = smov %s829_s24  ;;  %19 = sbr.rel (!%p17_p7) target bundleno = 6 (0x6), region = 81 }
 0x29c   :  { %451 = vsyncpa [#allocation3], 1 }
 0x29d   :  { %453 = vsyncpa [#allocation3 + $0x1], 1 }
 0x29e   :  { %454 = vsyncpa [#allocation6], 1 }
 0x29f   :  { %455 = vsyncpa [#allocation4], 1 }
 0x2a0   :  { %457 = vsyncpa [#allocation4 + $0x1], 1 }

</bundles_post_ra>
